<compile_context>
chip_gen: v7x
topology: tpu7x:2x2x1
jax: 0.10.0
libtpu: 0.0.40
codegen_flags: <defaults>
</compile_context>

<pallas_src>
import jax
import jax.numpy as jnp
from jax.experimental import pallas as pl
from jax.experimental.pallas import tpu as pltpu  # noqa: F401 (TPU backend)

THETA = 10.0            # cache-model temperature (hyperparameter, closed over)
FEAT_DIM = 128          # D: backbone feature dim (2048 in the real resnet-50)
NUM_MEM = 256           # M: number of cached (key, value) memory slots
NUM_CLASSES = 1000      # CacheModel always views its output as (1, 1000)
NUM_CLASSES_PAD = 1024  # lane-dense compute width (multiple of 128)


def cache_model_kernel(x_ref, w_ref, b_ref, keys_ref, vals_ref, o_ref):
    # x_ref: (C, H*W) f32   w_ref: (C, D) f32   b_ref: (1, D) f32
    # keys_ref: (D, M) f32  vals_ref: (M, NCP) bf16   o_ref: (1, NCP) f32
    x = x_ref[...].astype(jnp.float32)

    # --- backbone stand-in: GAP -> 1x1 conv -> bias -> ReLU ----------------
    gap = jnp.mean(x, axis=-1, keepdims=True)                 # (C, 1), lane reduce
    # (1,C)@(C,D) with tiny C: broadcast-mul + sublane reduce (no transpose)
    feat = jnp.sum(w_ref[...] * gap, axis=0, keepdims=True) + b_ref[...]  # (1, D)
    feat = jnp.maximum(feat, 0.0)                             # ReLU

    # --- cache head (exact CacheModel math) --------------------------------
    # x / ||x|| with theta folded into the scale; rsqrt goes to the EUP.
    ssum = jnp.sum(feat * feat)
    scale = THETA * jax.lax.rsqrt(ssum)
    xs = feat * scale                                         # (1, D)

    sims = jnp.exp(jnp.dot(xs, keys_ref[...],
                           preferred_element_type=jnp.float32))   # (1, M)

    vals = vals_ref[...].astype(jnp.float32)                  # bf16 -> f32 in vregs
    p_mem = jnp.dot(sims, vals,
                    preferred_element_type=jnp.float32)       # (1, NCP)
    o_ref[...] = jnp.log(p_mem)                               # log p_mem


def prepare_mem_vals(mem_vals_f32):
    """Pad class dim to a multiple of 128 and store in bf16 (halves the
    dominant HBM traffic).  Padding value 1.0 keeps log() finite everywhere."""
    M, NC = mem_vals_f32.shape
    pad = NUM_CLASSES_PAD - NC
    padded = jnp.concatenate(
        [mem_vals_f32, jnp.ones((M, pad), mem_vals_f32.dtype)], axis=1)
    return padded.astype(jnp.bfloat16)


@jax.jit
def cache_model(x_nchw, w, b, mem_keys, mem_vals_padded_bf16):
    _, C, H, W = x_nchw.shape
    HW = H * W
    D = w.shape[1]
    M = mem_keys.shape[1]
    NCP = mem_vals_padded_bf16.shape[1]

    # NCHW (N=1) -> (C, H*W): pure reshape, no transpose / extra HBM copy.
    x_chw = x_nchw[0].reshape(C, HW)

    cost = pl.CostEstimate(
        flops=2 * (C * HW + C * D + D * M + M * NCP),
        transcendentals=M + NCP + 1,                 # exp + log + rsqrt
        bytes_accessed=(x_chw.size * 4 + w.size * 4 + b.size * 4
                        + mem_keys.size * 4
                        + mem_vals_padded_bf16.size * 2 + NCP * 4),
    )

    out_padded = pl.pallas_call(
        cache_model_kernel,
        out_shape=jax.ShapeDtypeStruct((1, NCP), jnp.float32),
        in_specs=[pl.BlockSpec((C, HW), lambda: (0, 0)),
                  pl.BlockSpec((C, D), lambda: (0, 0)),
                  pl.BlockSpec((1, D), lambda: (0, 0)),
                  pl.BlockSpec((D, M), lambda: (0, 0)),
                  pl.BlockSpec((M, NCP), lambda: (0, 0))],
        out_specs=pl.BlockSpec((1, NCP), lambda: (0, 0)),
        cost_estimate=cost,
    )(x_chw, w, b, mem_keys, mem_vals_padded_bf16)

    return out_padded[:, :NUM_CLASSES]               # view(1, 1000)


def cache_model_ref(x, w, b, mem_keys, mem_vals_padded_bf16):
    # pure-JAX reference using the same (bf16-quantized, padded) parameters
    _, C, H, W = x.shape
    gap = jnp.mean(x[0].reshape(C, H * W), axis=1)[None, :]   # (1, C)
    feat = jnp.maximum(gap @ w + b, 0.0)                      # (1, D)
    xn = feat / jnp.sqrt(jnp.sum(feat * feat))
    sims = jnp.exp(THETA * (xn @ mem_keys))
    vals = mem_vals_padded_bf16.astype(jnp.float32)[:, :NUM_CLASSES]
    return jnp.log(sims @ vals).reshape(1, NUM_CLASSES)


if __name__ == "__main__":
    key = jax.random.PRNGKey(0)
    k_x, k_w, k_b, k_keys, k_vals = jax.random.split(key, 5)

    N, C, H, W = 1, 4, 16, 16      # batch must be 1: CacheModel views (1, 1000)
    x = jax.random.normal(k_x, (N, C, H, W), jnp.float32)

    # deterministic synthetic parameters
    w = jax.random.normal(k_w, (C, FEAT_DIM), jnp.float32) * 0.1   # 1x1 conv weight
    b = jax.random.normal(k_b, (1, FEAT_DIM), jnp.float32) * 0.1   # conv bias

    # mem_keys: unit-norm columns (stored normalized features), kept f32
    mem_keys = jax.random.normal(k_keys, (FEAT_DIM, NUM_MEM), jnp.float32)
    mem_keys = mem_keys / jnp.linalg.norm(mem_keys, axis=0, keepdims=True)
    # mem_vals: strictly-positive class distributions per memory slot
    mem_vals = jax.nn.softmax(
        jax.random.normal(k_vals, (NUM_MEM, NUM_CLASSES), jnp.float32), axis=-1)

    mem_vals_prepped = prepare_mem_vals(mem_vals)   # pad to 1024, cast to bf16

    out = cache_model(x, w, b, mem_keys, mem_vals_prepped)
    jax.block_until_ready(out)

    ref = cache_model_ref(x, w, b, mem_keys, mem_vals_prepped)
    assert out.shape == (1, NUM_CLASSES)
    assert jnp.all(jnp.isfinite(out))
    assert jnp.allclose(out, ref, rtol=1e-4, atol=1e-4)

    print("KERNEL_OK")
</pallas_src>

<mosaic_0001>
module attributes {stable_mosaic.version = 11 : i64} {
  func.func @cache_model_kernel(%arg0: memref<4x256xf32, #tpu.memory_space<vmem>>, %arg1: memref<4x128xf32, #tpu.memory_space<vmem>>, %arg2: memref<1x128xf32, #tpu.memory_space<vmem>>, %arg3: memref<128x256xf32, #tpu.memory_space<vmem>>, %arg4: memref<256x1024xbf16, #tpu.memory_space<vmem>>, %arg5: memref<1x1024xf32, #tpu.memory_space<vmem>>) attributes {dimension_semantics = [], scalar_prefetch = 0 : i64, scratch_operands = 0 : i64, tpu.core_type = #tpu.core_type<tc>} {
    %c0 = arith.constant 0 : index
    %c0_0 = arith.constant 0 : index
    %0 = vector.load %arg0[%c0, %c0_0] : memref<4x256xf32, #tpu.memory_space<vmem>>, vector<4x256xf32>
    %cst = arith.constant dense<0.000000e+00> : vector<4xf32>
    %1 = vector.multi_reduction <add>, %0, %cst [1] : vector<4x256xf32> to vector<4xf32>
    %2 = vector.shape_cast %1 : vector<4xf32> to vector<4x1xf32>
    %cst_1 = arith.constant 2.560000e+02 : f32
    %3 = vector.broadcast %cst_1 : f32 to vector<4x1xf32>
    %4 = arith.divf %2, %3 : vector<4x1xf32>
    %c0_2 = arith.constant 0 : index
    %c0_3 = arith.constant 0 : index
    %5 = vector.load %arg1[%c0_2, %c0_3] : memref<4x128xf32, #tpu.memory_space<vmem>>, vector<4x128xf32>
    %6 = vector.broadcast %4 : vector<4x1xf32> to vector<4x128xf32>
    %7 = arith.mulf %5, %6 : vector<4x128xf32>
    %cst_4 = arith.constant dense<0.000000e+00> : vector<128xf32>
    %8 = vector.multi_reduction <add>, %7, %cst_4 [0] : vector<4x128xf32> to vector<128xf32>
    %9 = vector.shape_cast %8 : vector<128xf32> to vector<1x128xf32>
    %c0_5 = arith.constant 0 : index
    %c0_6 = arith.constant 0 : index
    %10 = vector.load %arg2[%c0_5, %c0_6] : memref<1x128xf32, #tpu.memory_space<vmem>>, vector<1x128xf32>
    %11 = arith.addf %9, %10 : vector<1x128xf32>
    %cst_7 = arith.constant 0.000000e+00 : f32
    %12 = vector.broadcast %cst_7 : f32 to vector<1x128xf32>
    %13 = arith.maximumf %11, %12 : vector<1x128xf32>
    %14 = arith.mulf %13, %13 : vector<1x128xf32>
    %15 = vector.shape_cast %14 : vector<1x128xf32> to vector<1x1x128xf32>
    %cst_8 = arith.constant dense<0.000000e+00> : vector<1xf32>
    %16 = vector.multi_reduction <add>, %15, %cst_8 [1, 2] : vector<1x1x128xf32> to vector<1xf32>
    %17 = vector.shape_cast %16 : vector<1xf32> to vector<1x1x1xf32>
    %18 = vector.extract %17[0, 0, 0] : f32 from vector<1x1x1xf32>
    %19 = math.rsqrt %18 : f32
    %cst_9 = arith.constant 1.000000e+01 : f32
    %20 = arith.mulf %cst_9, %19 : f32
    %21 = vector.broadcast %20 : f32 to vector<1x128xf32>
    %22 = arith.mulf %13, %21 : vector<1x128xf32>
    %c0_10 = arith.constant 0 : index
    %c0_11 = arith.constant 0 : index
    %23 = vector.load %arg3[%c0_10, %c0_11] : memref<128x256xf32, #tpu.memory_space<vmem>>, vector<128x256xf32>
    %cst_12 = arith.constant dense<0.000000e+00> : vector<1x256xf32>
    %24 = tpu.matmul %22, %23, %cst_12 {dimension_numbers = #tpu.dot_dimension_numbers<[1], [0], [0], [1], [0, 0, 1, 1], [], []>} : vector<1x128xf32>, vector<128x256xf32>, vector<1x256xf32> -> vector<1x256xf32>
    %25 = math.exp %24 : vector<1x256xf32>
    %c0_13 = arith.constant 0 : index
    %c0_14 = arith.constant 0 : index
    %26 = vector.load %arg4[%c0_13, %c0_14] : memref<256x1024xbf16, #tpu.memory_space<vmem>>, vector<256x1024xbf16>
    %27 = arith.extf %26 : vector<256x1024xbf16> to vector<256x1024xf32>
    %cst_15 = arith.constant dense<0.000000e+00> : vector<1x1024xf32>
    %28 = tpu.matmul %25, %27, %cst_15 {dimension_numbers = #tpu.dot_dimension_numbers<[1], [0], [0], [1], [0, 0, 1, 1], [], []>} : vector<1x256xf32>, vector<256x1024xf32>, vector<1x1024xf32> -> vector<1x1024xf32>
    %29 = math.log %28 : vector<1x1024xf32>
    %c0_16 = arith.constant 0 : index
    %c0_17 = arith.constant 0 : index
    %30 = vector.load %arg5[%c0_16, %c0_17] : memref<1x1024xf32, #tpu.memory_space<vmem>>, vector<1x1024xf32>
    tpu.vector_store %arg5[%c0_16, %c0_17], %29 {strides = array<i32>} : memref<1x1024xf32, #tpu.memory_space<vmem>>, vector<1x1024xf32>,
    return
  }
}

</mosaic_0001>

<bundles_post_ra>
// kernel: squeeze.1
= control target key start
LH: loop header
LB: loop body
LE: loop exit
PB: predicated region body
PF: predicated region fallthrough
CT: control target
= control target key end

     0   :  { %2 = vsyncpa [#allocation1], 0  ;;  %s237_s6 = smov [#allocation0]   ;;  %s295_s0 = inlined_call_operand.hbm [shape: f32[1,4,16,16], index: 0, kind: input, shape index: {}]   ;;  %s296_s1 = inlined_call_operand.vmem [shape: f32[4,256], index: 1, kind: output, shape index: {}]  }
   0x1   :  { %s7_s7 = sshll.u32 %s237_s6, 4  ;;  %s213_s10 = scalar_lea.hbm %s295_s0, 1024  ;;  %s8_s7 = int_to_ptr.vmem [resolvable:$true] %s7_s7 }
   0x2   :  { %p214_p0 = scmp.ne.s32.totalorder %s295_s0, %s213_s10  ;;  %p217_p1 = scmp.lt.u32.totalorder %s213_s10, %s295_s0 }
   0x4   :  { %p219_p2 = pnand %p217_p1, %p214_p0 }
   0x6   :  { %222 = shalt.err (!%p219_p2)
}
   0x7   :  { %s223_s15 = scalar_lea.vmem %s8_s7, 1024  ;;  %p228_p4 = scmp.lt.s32.totalorder %s8_s7, %s8_s7 }
   0x8   :  { %p224_p3 = scmp.ne.s32.totalorder %s8_s7, %s223_s15  ;;  %p229_p5 = scmp.lt.s32.totalorder %s223_s15, %s223_s15 }
   0xa   :  { %p230_p6 = por %p229_p5, %p228_p4 }
   0xc   :  { %p231_p7 = pnand %p230_p6, %p224_p3 }
   0xe   :  { %234 = shalt.err (!%p231_p7)
}
   0xf   :  { %10 = dma.hbm_to_vmem [thread:$0]  %s295_s0, 1024, %s8_s7, [#allocation1]  }
  0x10   :  { %235 = dma.done.wait [#allocation1], 1024  }
  0x11   :  { %236 = vsyncadd [#allocation1], 4294966272  ;;  %s25_s0 = smov 3  ;;  %s28_s18 = smov 12  ;;  %vm30_vm0 = vcmask 1043458   ;;  %vm35_vm1 = vcmask 1045508  }
  0x12   :  { %s33_s19 = smov 48  ;;  %s38_s20 = smov 192  ;;  %vm40_vm2 = vcmask 1047558   ;;  %v26_v0 = vld [vmem:[#allocation0 + $0x7] ss:$16 sm:%s25_s0]   ;;  %vm14_vm3 = vcmask 1047556  }
  0x13   :  { %s73_s21 = smov 3  ;;  %s76_s22 = smov 12  ;;  %v29_v1 = vld [vmem:[#allocation0 + $0x7] ss:$16 sm:%s28_s18]   ;;  %v34_v2 = vld [vmem:[#allocation0 - $0x31] ss:$16 sm:%s33_s19]  }
  0x14   :  { %s81_s23 = smov 48  ;;  %s86_s24 = smov 192  ;;  %v31_v3 = vsel %vm30_vm0, %v29_v1, %v26_v0  ;;  %v39_v4 = vld [vmem:[#allocation0 - $0x31] ss:$16 sm:%s38_s20]   ;;  %v74_v5 = vld [vmem:[#allocation0 + $0x5] ss:$16 sm:%s73_s21]  }
  0x15   :  { %s49_s25 = smov 3  ;;  %s52_s26 = smov 12  ;;  %v77_v6 = vld [vmem:[#allocation0 + $0x5] ss:$16 sm:%s76_s22]   ;;  %v36_v7 = vsel %vm35_vm1, %v34_v2, %v31_v3  ;;  %v82_v9 = vld [vmem:[#allocation0 - $0x33] ss:$16 sm:%s81_s23]  }
  0x16   :  { %s57_s27 = smov 48  ;;  %s62_s28 = smov 192  ;;  %v79_v8 = vsel %vm30_vm0, %v77_v6, %v74_v5  ;;  %v87_v10 = vld [vmem:[#allocation0 - $0x33] ss:$16 sm:%s86_s24]   ;;  %v50_v11 = vld [vmem:[#allocation0 + $0x6] ss:$16 sm:%s49_s25]   ;;  %v41_v12 = vsel %vm40_vm2, %v39_v4, %v36_v7 }
  0x17   :  { %v84_v13 = vsel %vm35_vm1, %v82_v9, %v79_v8  ;;  %v53_v14 = vld [vmem:[#allocation0 + $0x6] ss:$16 sm:%s52_s26]   ;;  %v58_v15 = vld [vmem:[#allocation0 - $0x32] ss:$16 sm:%s57_s27]   ;;  %s238_s29 = smov 112   ;;  %s97_s30 = smov 3 }
  0x18   :  { %v63_v16 = vld [vmem:[#allocation0 - $0x32] ss:$16 sm:%s62_s28]   ;;  %42 = vrot.lane.b32.xlu0 %v41_v12, %s238_s29  ;;  %v89_v17 = vsel %vm40_vm2, %v87_v10, %v84_v13  ;;  %v55_v18 = vsel %vm30_vm0, %v53_v14, %v50_v11  ;;  %s239_s2 = smov 80   ;;  %v98_v20 = vld [vmem:[#allocation0 + $0x4] ss:$16 sm:%s97_s30]   ;;  %s100_s3 = smov 12 }
  0x19   :  { %90 = vrot.lane.b32.xlu1 %v89_v17, %s239_s2  ;;  %v60_v19 = vsel %vm35_vm1, %v58_v15, %v55_v18  ;;  %s105_s4 = smov 48  ;;  %v101_v22 = vld [vmem:[#allocation0 + $0x4] ss:$16 sm:%s100_s3]   ;;  %s110_s5 = smov 192  ;;  %vm16_vm4 = vcmask 130048   ;;  %vm44_vm5 = vcmask 1048448  }
  0x1a   :  { %v65_v21 = vsel %vm40_vm2, %v63_v16, %v60_v19  ;;  %v106_v23 = vld [vmem:[#allocation0 - $0x34] ss:$16 sm:%s105_s4]   ;;  %v103_v24 = vsel %vm30_vm0, %v101_v22, %v98_v20  ;;  %s121_s6 = smov 3  ;;  %s124_s7 = smov 12  ;;  %vm68_vm6 = vcmask 917248   ;;  %vm92_vm7 = vcmask 786048  }
  0x1b   :  { %v111_v25 = vld [vmem:[#allocation0 - $0x34] ss:$16 sm:%s110_s5]   ;;  %s240_s8 = smov 96   ;;  %v108_v26 = vsel %vm35_vm1, %v106_v23, %v103_v24  ;;  %v122_v27 = vld [vmem:[#allocation0 + $0x3] ss:$16 sm:%s121_s6]   ;;  %s129_s9 = smov 48 }
  0x1c   :  { %66 = vrot.lane.b32.xlu0 %v65_v21, %s240_s8  ;;  %v125_v28 = vld [vmem:[#allocation0 + $0x3] ss:$16 sm:%s124_s7]   ;;  %s134_s10 = smov 192  ;;  %v113_v29 = vsel %vm40_vm2, %v111_v25, %v108_v26  ;;  %v130_v31 = vld [vmem:[#allocation0 - $0x35] ss:$16 sm:%s129_s9]   ;;  %s145_s11 = smov 3 }
  0x1d   :  { %v127_v30 = vsel %vm30_vm0, %v125_v28, %v122_v27  ;;  %v135_v32 = vld [vmem:[#allocation0 - $0x35] ss:$16 sm:%s134_s10]   ;;  %s241_s12 = smov 64   ;;  %v146_v34 = vld [vmem:[#allocation0 + $0x2] ss:$16 sm:%s145_s11]   ;;  %s148_s13 = smov 12 }
  0x1e   :  { %114 = vrot.lane.b32.xlu1 %v113_v29, %s241_s12  ;;  %v132_v33 = vsel %vm35_vm1, %v130_v31, %v127_v30  ;;  %s153_s14 = smov 48  ;;  %v149_v36 = vld [vmem:[#allocation0 + $0x2] ss:$16 sm:%s148_s13]   ;;  %s158_s15 = smov 192  ;;  %vm116_vm8 = vcmask 654848   ;;  %vm140_vm9 = vcmask 523648  }
  0x1f   :  { %v137_v35 = vsel %vm40_vm2, %v135_v32, %v132_v33  ;;  %v154_v37 = vld [vmem:[#allocation0 - $0x36] ss:$16 sm:%s153_s14]   ;;  %v12_v38 = vld [vmem:[#allocation0] ss:$8 sm:$0xf]   ;;  %s242_s16 = smov 48   ;;  %v151_v39 = vsel %vm30_vm0, %v149_v36, %v146_v34 }
  0x20   :  { %138 = vrot.lane.b32.xlu0 %v137_v35, %s242_s16  ;;  %v159_v40 = vld [vmem:[#allocation0 - $0x36] ss:$16 sm:%s158_s15]   ;;  %s169_s17 = smov 3  ;;  %s172_s0 = smov 12  ;;  %v156_v41 = vsel %vm35_vm1, %v154_v37, %v151_v39  ;;  %vm164_vm10 = vcmask 392448   ;;  %vm188_vm11 = vcmask 261248  }
  0x21   :  { %v170_v42 = vld [vmem:[#allocation0 + $0x1] ss:$16 sm:%s169_s17]   ;;  %s177_s18 = smov 48  ;;  %s182_s19 = smov 192  ;;  %v161_v44 = vsel %vm40_vm2, %v159_v40, %v156_v41 }
  0x22   :  { %v173_v43 = vld [vmem:[#allocation0 + $0x1] ss:$16 sm:%s172_s0]   ;;  %v178_v46 = vld [vmem:[#allocation0 - $0x37] ss:$16 sm:%s177_s18]   ;;  %s243_s20 = smov 32   ;;  %s244_s21 = smov 16  }
  0x23   :  { %v175_v45 = vsel %vm30_vm0, %v173_v43, %v170_v42  ;;  %v183_v47 = vld [vmem:[#allocation0 - $0x37] ss:$16 sm:%s182_s19]   ;;  %162 = vrot.lane.b32.xlu1 %v161_v44, %s243_s20  ;;  %v13_v49 = vld [vmem:[#allocation0] ss:$8 sm:$0xf0]  }
  0x24   :  { %v180_v48 = vsel %vm35_vm1, %v178_v46, %v175_v45  ;;  %v15_v51 = vsel %vm14_vm3, %v13_v49, %v12_v38 }
  0x25   :  { %v185_v50 = vsel %vm40_vm2, %v183_v47, %v180_v48  ;;  %17 = vst.msk [vmem:[#allocation2] ss:$8 sm:$0x3] %vm16_vm4, %v15_v51   ;;  %19 = vst.msk [vmem:[#allocation2 - $0xf] ss:$8 sm:$0xc] %vm16_vm4, %v15_v51  }
  0x26   :  { %186 = vrot.lane.b32.xlu0 %v185_v50, %s244_s21  ;;  %21 = vst.msk [vmem:[#allocation2 - $0x1e] ss:$8 sm:$0x30] %vm16_vm4, %v15_v51   ;;  %23 = vst.msk [vmem:[#allocation2 - $0x2d] ss:$8 sm:$0xc0] %vm16_vm4, %v15_v51  }
  0x8a   :  { %v43_v52 = vpop.permute.xlu0 %42  }
  0x8b   :  { %v91_v53 = vpop.permute.xlu1 %90   ;;  %45 = vst.msk [vmem:[#allocation2] sm:$0xf] %vm44_vm5, %v43_v52   ;;  %47 = vst.msk [vmem:[#allocation2 + $0x4] sm:$0xf0] %vm44_vm5, %v43_v52  }
  0x8e   :  { %v67_v54 = vpop.permute.xlu0 %66  }
  0x8f   :  { %69 = vst.msk [vmem:[#allocation2] sm:$0xf] %vm68_vm6, %v67_v54   ;;  %71 = vst.msk [vmem:[#allocation2 + $0x4] sm:$0xf0] %vm68_vm6, %v67_v54  }
  0x90   :  { %93 = vst.msk [vmem:[#allocation2] sm:$0xf] %vm92_vm7, %v91_v53   ;;  %95 = vst.msk [vmem:[#allocation2 + $0x4] sm:$0xf0] %vm92_vm7, %v91_v53   ;;  %v115_v55 = vpop.permute.xlu1 %114  }
  0x91   :  { %117 = vst.msk [vmem:[#allocation2] sm:$0xf] %vm116_vm8, %v115_v55   ;;  %119 = vst.msk [vmem:[#allocation2 + $0x4] sm:$0xf0] %vm116_vm8, %v115_v55  }
  0x92   :  { %v139_v56 = vpop.permute.xlu0 %138  }
  0x93   :  { %141 = vst.msk [vmem:[#allocation2] sm:$0xf] %vm140_vm9, %v139_v56   ;;  %143 = vst.msk [vmem:[#allocation2 + $0x4] sm:$0xf0] %vm140_vm9, %v139_v56  }
  0x95   :  { %v163_v57 = vpop.permute.xlu1 %162  }
  0x96   :  { %165 = vst.msk [vmem:[#allocation2] sm:$0xf] %vm164_vm10, %v163_v57   ;;  %167 = vst.msk [vmem:[#allocation2 + $0x4] sm:$0xf0] %vm164_vm10, %v163_v57  }
  0x98   :  { %v187_v58 = vpop.permute.xlu0 %186  }
  0x99   :  { %189 = vst.msk [vmem:[#allocation2] sm:$0xf] %vm188_vm11, %v187_v58   ;;  %191 = vst.msk [vmem:[#allocation2 + $0x4] sm:$0xf0] %vm188_vm11, %v187_v58  }
  0xa0   :  { %v195_v59 = vld [vmem:[#allocation2] sm:$0xf]  ;;  %v199_v60 = vld [vmem:[#allocation2 + $0x8] sm:$0xf] }
  0xa1   :  { %197 = vst [vmem:[%s296_s1] sm:$0xf] %v195_v59  ;;  %204 = vst [vmem:[%s296_s1 + $0x4] sm:$0xf] %v199_v60 }
  0xa2   :  { %203 = vsyncpa [#allocation1], 1 }

// kernel: cache_model.1
= control target key start
LH: loop header
LB: loop body
LE: loop exit
PB: predicated region body
PF: predicated region fallthrough
CT: control target
= control target key end

     0   :  { %10 = vsyncpa [#allocation3], 0  ;;  %s1595_s0 = inlined_call_operand.vmem [shape: f32[4,256], index: 0, kind: input, shape index: {}]   ;;  %s1596_s1 = inlined_call_operand.vmem [shape: f32[4,128], index: 1, kind: input, shape index: {}]   ;;  %s1597_s2 = inlined_call_operand.vmem [shape: f32[1,128], index: 2, kind: input, shape index: {}]   ;;  %s1598_s3 = inlined_call_operand.hbm [shape: f32[128,256], index: 3, kind: input, shape index: {}]   ;;  %s1599_s4 = inlined_call_operand.hbm [shape: bf16[256,1024], index: 4, kind: input, shape index: {}]   ;;  %s1600_s5 = inlined_call_operand.hbm [shape: f32[1,1024], index: 5, kind: output, shape index: {}]  }
   0x1   :  { %11 = vsyncpa [#allocation6], 0 }
   0x2   :  { %12 = vsyncpa [#allocation4], 0  ;;  %s1481_s18 = smov [#allocation2]   ;;  %s1409_s22 = scalar_lea.hbm %s1598_s3, 4096 }
   0x3   :  { %s24_s19 = sshll.u32 %s1481_s18, 4  ;;  %p1410_p0 = scmp.ne.s32.totalorder %s1598_s3, %s1409_s22  ;;  %s25_s19 = int_to_ptr.vmem [resolvable:$true] %s24_s19 }
   0x4   :  { %p1413_p1 = scmp.lt.u32.totalorder %s1409_s22, %s1598_s3 }
   0x6   :  { %p1415_p2 = pnand %p1413_p1, %p1410_p0 }
   0x8   :  { %1418 = shalt.err (!%p1415_p2)
}
   0x9   :  { %s1419_s27 = scalar_lea.vmem %s25_s19, 4096  ;;  %p1424_p4 = scmp.lt.s32.totalorder %s25_s19, %s25_s19 }
   0xa   :  { %p1420_p3 = scmp.ne.s32.totalorder %s25_s19, %s1419_s27  ;;  %p1425_p5 = scmp.lt.s32.totalorder %s1419_s27, %s1419_s27 }
   0xc   :  { %p1426_p6 = por %p1425_p5, %p1424_p4 }
   0xe   :  { %p1427_p7 = pnand %p1426_p6, %p1420_p3 }
  0x10   :  { %1430 = shalt.err (!%p1427_p7)
}
  0x11   :  { %s1482_s28 = smov 256   ;;  %s1483_s29 = smov 16  }
  0x12   :  { %30 = dma.hbm_to_vmem [thread:$0]  %s1598_s3, 4096, %s25_s19, [#allocation3], %s1482_s28, %s1482_s28, %s1483_s29  }
  0x13   :  { %s1484_s7 = smov [#allocation5]   ;;  %s1431_s11 = scalar_lea.hbm %s1599_s4, 16384 }
  0x14   :  { %s36_s8 = sshll.u32 %s1484_s7, 4  ;;  %p1432_p8 = scmp.ne.s32.totalorder %s1599_s4, %s1431_s11  ;;  %s37_s8 = int_to_ptr.vmem [resolvable:$true] %s36_s8 }
  0x15   :  { %p1435_p9 = scmp.lt.u32.totalorder %s1431_s11, %s1599_s4 }
  0x17   :  { %p1437_p10 = pnand %p1435_p9, %p1432_p8 }
  0x19   :  { %1440 = shalt.err (!%p1437_p10)
}
  0x1a   :  { %s1441_s16 = scalar_lea.vmem %s37_s8, 16384  ;;  %p1446_p12 = scmp.lt.s32.totalorder %s37_s8, %s37_s8 }
  0x1b   :  { %p1442_p11 = scmp.ne.s32.totalorder %s37_s8, %s1441_s16  ;;  %p1447_p13 = scmp.lt.s32.totalorder %s1441_s16, %s1441_s16 }
  0x1d   :  { %p1448_p0 = por %p1447_p13, %p1446_p12 }
  0x1f   :  { %p1449_p1 = pnand %p1448_p0, %p1442_p11 }
  0x21   :  { %1452 = shalt.err (!%p1449_p1)
}
  0x22   :  { %s1485_s3 = smov 512   ;;  %s1486_s17 = smov 32  }
  0x23   :  { %42 = dma.hbm_to_vmem [thread:$0]  %s1599_s4, 16384, %s37_s8, [#allocation6], %s1485_s3, %s1485_s3, %s1486_s17  }
  0x24   :  { %1475 = dma.done.wait [#allocation3], 4096  }
  0x25   :  { %1476 = vsyncadd [#allocation3], 4294963200 }
  0x26   :  { %1477 = dma.done.wait [#allocation6], 16384  }
  0x27   :  { %1478 = vsyncadd [#allocation6], 4294950912  ;;  %vm53_vm0 = vcmask 1043456   ;;  %v49_v0 = vld [vmem:[%s1595_s0] sm:$0xff]  ;;  %vm74_vm1 = vcmask 1040384   ;;  %v92_v21 = vld [vmem:[#allocation2 + $0x8] sm:$0xff] }
  0x28   :  { %v51_v1 = vcombine.high %v49_v0, %v49_v0  ;;  %v54_v2 = vsel %vm53_vm0, %v49_v0, 0.0  ;;  %v61_v5 = vld [vmem:[%s1596_s1] sm:$0xf]  ;;  %v94_v22 = vld [vmem:[#allocation2 + $0x18] sm:$0xff]  ;;  %v93_v25 = vld [vmem:[#allocation2 + $0x10] sm:$0xff]  ;;  %s1489_s25 = smov [#allocation7]  }
  0x29   :  { %v70_v15 = vld [vmem:[%s1597_s2] sm:$0x1]  ;;  %v957_v24 = vpack.c.bf16 %v94_v22, %v92_v21  ;;  %v96_v26 = vld [vmem:[#allocation2 + $0x28] sm:$0xff]  ;;  %v98_v27 = vld [vmem:[#allocation2 + $0x38] sm:$0xff]  ;;  %s947_s26 = sshll.u32 %s1489_s25, 4  ;;  %s948_s26 = int_to_ptr.vmem [resolvable:$true] %s947_s26 }
  0x2a   :  { %v55_v3 = vsel %vm53_vm0, %v51_v1, 0.0  ;;  %v91_v23 = vld [vmem:[#allocation2] sm:$0xff]  ;;  %v961_v29 = vpack.c.bf16 %v98_v27, %v96_v26  ;;  %v97_v31 = vld [vmem:[#allocation2 + $0x30] sm:$0xff]  ;;  %v100_v32 = vld [vmem:[#allocation2 + $0x48] sm:$0xff]  ;;  %s1453_s27 = scalar_lea.vmem %s948_s26, 128  ;;  %p1458_p3 = scmp.lt.s32.totalorder %s948_s26, %s948_s26 }
  0x2b   :  { %v56_v4 = vadd.f32 %v55_v3, %v54_v2  ;;  %v959_v28 = vpack.c.bf16 %v93_v25, %v91_v23  ;;  %v95_v30 = vld [vmem:[#allocation2 + $0x20] sm:$0xff]  ;;  %958 = vmatprep.subr.bf16.mxu0 %v957_v24  ;;  %v102_v33 = vld [vmem:[#allocation2 + $0x58] sm:$0xff]  ;;  %v101_v37 = vld [vmem:[#allocation2 + $0x50] sm:$0xff]  ;;  %p1454_p2 = scmp.ne.s32.totalorder %s948_s26, %s1453_s27  ;;  %p1459_p4 = scmp.lt.s32.totalorder %s1453_s27, %s1453_s27 }
  0x2c   :  { %v963_v34 = vpack.c.bf16 %v97_v31, %v95_v30  ;;  %v965_v35 = vpack.c.bf16 %v102_v33, %v100_v32  ;;  %v99_v36 = vld [vmem:[#allocation2 + $0x40] sm:$0xff]  ;;  %v104_v38 = vld [vmem:[#allocation2 + $0x68] sm:$0xff]  ;;  %v106_v39 = vld [vmem:[#allocation2 + $0x78] sm:$0xff] }
  0x2d   :  { %57 = vadd.xlane.f32.xlu0 %v56_v4  ;;  %960 = vmatpush1.bf16.msra.mxu0 %v959_v28  ;;  %v967_v40 = vpack.c.bf16 %v101_v37, %v99_v36  ;;  %v969_v41 = vpack.c.bf16 %v106_v39, %v104_v38  ;;  %v103_v42 = vld [vmem:[#allocation2 + $0x60] sm:$0xff]  ;;  %v105_v43 = vld [vmem:[#allocation2 + $0x70] sm:$0xff]  ;;  %v108_v44 = vld [vmem:[#allocation2 + $0x88] sm:$0xff]  ;;  %p1460_p5 = por %p1459_p4, %p1458_p3 }
  0x2e   :  { %962 = vmatprep.subr.bf16.mxu0 %v961_v29  ;;  %v110_v45 = vld [vmem:[#allocation2 + $0x98] sm:$0xff]  ;;  %v971_v46 = vpack.c.bf16 %v105_v43, %v103_v42  ;;  %v107_v48 = vld [vmem:[#allocation2 + $0x80] sm:$0xff]  ;;  %v109_v49 = vld [vmem:[#allocation2 + $0x90] sm:$0xff] }
  0x2f   :  { %v973_v47 = vpack.c.bf16 %v110_v45, %v108_v44  ;;  %v112_v50 = vld [vmem:[#allocation2 + $0xa8] sm:$0xff]  ;;  %v114_v51 = vld [vmem:[#allocation2 + $0xb8] sm:$0xff]  ;;  %v975_v52 = vpack.c.bf16 %v109_v49, %v107_v48  ;;  %v111_v54 = vld [vmem:[#allocation2 + $0xa0] sm:$0xff]  ;;  %p1461_p6 = pnand %p1460_p5, %p1454_p2 }
  0x30   :  { %v977_v53 = vpack.c.bf16 %v114_v51, %v112_v50  ;;  %v113_v55 = vld [vmem:[#allocation2 + $0xb0] sm:$0xff]  ;;  %v116_v56 = vld [vmem:[#allocation2 + $0xc8] sm:$0xff]  ;;  %v118_v57 = vld [vmem:[#allocation2 + $0xd8] sm:$0xff] }
  0x31   :  { %964 = vmatpush1.bf16.msra.mxu0 %v963_v34  ;;  %v979_v58 = vpack.c.bf16 %v113_v55, %v111_v54  ;;  %v981_v59 = vpack.c.bf16 %v118_v57, %v116_v56  ;;  %v115_v60 = vld [vmem:[#allocation2 + $0xc0] sm:$0xff]  ;;  %v117_v61 = vld [vmem:[#allocation2 + $0xd0] sm:$0xff]  ;;  %v120_v63 = vld [vmem:[#allocation2 + $0xe8] sm:$0xff] }
  0x32   :  { %966 = vmatprep.subr.bf16.mxu0 %v965_v35  ;;  %v983_v62 = vpack.c.bf16 %v117_v61, %v115_v60  ;;  %v122_v0 = vld [vmem:[#allocation2 + $0xf8] sm:$0xff]  ;;  %v119_v2 = vld [vmem:[#allocation2 + $0xe0] sm:$0xff]  ;;  %v121_v3 = vld [vmem:[#allocation2 + $0xf0] sm:$0xff] }
  0x33   :  { %v985_v1 = vpack.c.bf16 %v122_v0, %v120_v63  ;;  %v987_v4 = vpack.c.bf16 %v121_v3, %v119_v2  ;;  %v214_v24 = vld [vmem:[#allocation5 + $0x80] sm:$0xff] }
  0x34   :  { %v218_v25 = vld [vmem:[#allocation5 + $0xa0] sm:$0xff] }
  0x35   :  { %968 = vmatpush1.bf16.msra.mxu0 %v967_v40  ;;  %v1249_v26 = vcombine.high %v214_v24, %v218_v25  ;;  %v1250_v28 = vcombine.low %v214_v24, %v218_v25  ;;  %v222_v30 = vld [vmem:[#allocation5 + $0xc0] sm:$0xff]  ;;  %v231_v24 = vld [vmem:[#allocation5 + $0x108] sm:$0xff] }
  0x36   :  { %970 = vmatprep.subr.bf16.mxu0 %v969_v41  ;;  %v226_v31 = vld [vmem:[#allocation5 + $0xe0] sm:$0xff]  ;;  %v235_v25 = vld [vmem:[#allocation5 + $0x128] sm:$0xff] }
  0x37   :  { %v1251_v32 = vcombine.high %v222_v30, %v226_v31  ;;  %v1252_v33 = vcombine.low %v222_v30, %v226_v31  ;;  %v230_v34 = vld [vmem:[#allocation5 + $0x100] sm:$0xff] }
  0x38   :  { %v234_v35 = vld [vmem:[#allocation5 + $0x120] sm:$0xff] }
  0x39   :  { %972 = vmatpush1.bf16.msra.mxu0 %v971_v46  ;;  %v1253_v36 = vcombine.high %v230_v34, %v234_v35  ;;  %v1254_v37 = vcombine.low %v230_v34, %v234_v35  ;;  %v238_v38 = vld [vmem:[#allocation5 + $0x140] sm:$0xff] }
  0x3a   :  { %974 = vmatprep.subr.bf16.mxu0 %v973_v47  ;;  %v242_v39 = vld [vmem:[#allocation5 + $0x160] sm:$0xff] }
  0x3b   :  { %v1255_v40 = vcombine.high %v238_v38, %v242_v39  ;;  %v1256_v41 = vcombine.low %v238_v38, %v242_v39  ;;  %v246_v42 = vld [vmem:[#allocation5 + $0x180] sm:$0xff] }
  0x3c   :  { %v250_v43 = vld [vmem:[#allocation5 + $0x1a0] sm:$0xff] }
  0x3d   :  { %976 = vmatpush1.bf16.msra.mxu0 %v975_v52  ;;  %v1257_v44 = vcombine.high %v246_v42, %v250_v43  ;;  %v1258_v45 = vcombine.low %v246_v42, %v250_v43  ;;  %v254_v46 = vld [vmem:[#allocation5 + $0x1c0] sm:$0xff] }
  0x3e   :  { %978 = vmatprep.subr.bf16.mxu0 %v977_v53  ;;  %v258_v47 = vld [vmem:[#allocation5 + $0x1e0] sm:$0xff] }
  0x3f   :  { %v1259_v48 = vcombine.high %v254_v46, %v258_v47  ;;  %v1260_v49 = vcombine.low %v254_v46, %v258_v47  ;;  %v262_v50 = vld [vmem:[#allocation5 + $0x200] sm:$0xff] }
  0x40   :  { %v266_v51 = vld [vmem:[#allocation5 + $0x220] sm:$0xff] }
  0x41   :  { %980 = vmatpush1.bf16.msra.mxu0 %v979_v58  ;;  %v1261_v52 = vcombine.high %v262_v50, %v266_v51  ;;  %v1262_v53 = vcombine.low %v262_v50, %v266_v51  ;;  %v270_v54 = vld [vmem:[#allocation5 + $0x240] sm:$0xff] }
  0x42   :  { %982 = vmatprep.subr.bf16.mxu0 %v981_v59  ;;  %v274_v55 = vld [vmem:[#allocation5 + $0x260] sm:$0xff] }
  0x43   :  { %v1263_v56 = vcombine.high %v270_v54, %v274_v55  ;;  %v1264_v57 = vcombine.low %v270_v54, %v274_v55  ;;  %v278_v58 = vld [vmem:[#allocation5 + $0x280] sm:$0xff] }
  0x44   :  { %v282_v59 = vld [vmem:[#allocation5 + $0x2a0] sm:$0xff] }
  0x45   :  { %984 = vmatpush1.bf16.msra.mxu0 %v983_v62  ;;  %v1265_v60 = vcombine.high %v278_v58, %v282_v59  ;;  %v1266_v61 = vcombine.low %v278_v58, %v282_v59  ;;  %v286_v62 = vld [vmem:[#allocation5 + $0x2c0] sm:$0xff] }
  0x46   :  { %986 = vmatprep.subr.bf16.mxu0 %v985_v1  ;;  %v290_v63 = vld [vmem:[#allocation5 + $0x2e0] sm:$0xff] }
  0x47   :  { %v1267_v0 = vcombine.high %v286_v62, %v290_v63  ;;  %v1268_v1 = vcombine.low %v286_v62, %v290_v63  ;;  %v1565_v2 = vld [vmem:[#allocation5 + $0x300] sm:$0xff]  ;;  %v307_v62 = vld [vmem:[#allocation5 + $0x368] sm:$0xff] }
  0x48   :  { %v1567_v3 = vld [vmem:[#allocation5 + $0x320] sm:$0xff] }
  0x49   :  { %988 = vmatpush1.bf16.msra.mxu0 %v987_v4  ;;  %v1269_v4 = vcombine.high %v1565_v2, %v1567_v3  ;;  %v302_v58 = vld [vmem:[#allocation5 + $0x340] sm:$0xff] }
  0x4a   :  { %v306_v59 = vld [vmem:[#allocation5 + $0x360] sm:$0xff] }
  0xba   :  { %v58_v6 = vpop.xlane.xlu0 %57 }
  0xbb   :  { %v60_v7 = vmul.f32 0.00390625, %v58_v6 }
  0xbd   :  { %v62_v8 = vmul.f32 %v61_v5, %v60_v7  ;;  %v1487_v7 = vmov 0.0  }
  0xbe   :  { %187 = vmatprep.mubr.f32.mxu0 %v1487_v7  ;;  %v207_v7 = vld [vmem:[#allocation5 + $0x48] sm:$0xff] }
  0xbf   :  { %v63_v9 = vsel %vm53_vm0, %v62_v8, 0.0  ;;  %v198_v8 = vld [vmem:[#allocation5] sm:$0xff] }
  0xc0   :  { %v64_v10 = vrot.slane %v63_v9, 4 }
  0xc2   :  { %v65_v11 = vadd.f32 %v64_v10, %v63_v9  ;;  %v202_v9 = vld [vmem:[#allocation5 + $0x20] sm:$0xff]  ;;  %v1557_v10 = vld [vmem:[#allocation5 + $0x8] sm:$0xff] }
  0xc4   :  { %v66_v12 = vrot.slane %v65_v11, 2 }
  0xc6   :  { %v67_v13 = vadd.f32 %v66_v12, %v65_v11  ;;  %v1245_v12 = vcombine.high %v198_v8, %v202_v9 }
  0xc8   :  { %v68_v14 = vrot.slane %v67_v13, 1  ;;  %990 = vmatprep.subr.bf16.mxu1 %v1245_v12 }
  0xca   :  { %v69_v16 = vadd.f32 %v68_v14, %v67_v13  ;;  %v1559_v13 = vld [vmem:[#allocation5 + $0x28] sm:$0xff]  ;;  %v1246_v14 = vcombine.low %v198_v8, %v202_v9 }
  0xcb   :  { %v211_v8 = vld [vmem:[#allocation5 + $0x68] sm:$0xff] }
  0xcc   :  { %v71_v17 = vadd.f32 %v70_v15, %v69_v16  ;;  %v206_v15 = vld [vmem:[#allocation5 + $0x40] sm:$0xff]  ;;  %992 = vmatpush1.bf16.msra.mxu1 %v1246_v14  ;;  %v1279_v12 = vcombine.high %v207_v7, %v211_v8  ;;  %v215_v14 = vld [vmem:[#allocation5 + $0x88] sm:$0xff] }
  0xcd   :  { %v210_v16 = vld [vmem:[#allocation5 + $0x60] sm:$0xff] }
  0xce   :  { %v1553_v18 = vmax.f32 %v71_v17, 0.0  ;;  %v1277_v17 = vcombine.high %v1557_v10, %v1559_v13  ;;  %v1248_v22 = vcombine.low %v206_v15, %v210_v16 }
  0xd0   :  { %v73_v19 = vmul.f32 %v1553_v18, %v1553_v18  ;;  %1054 = vmatprep.subr.bf16.mxu0 %v1277_v17 }
  0xd2   :  { %v75_v20 = vsel %vm74_vm1, %v73_v19, 0.0  ;;  %v1278_v19 = vcombine.low %v1557_v10, %v1559_v13  ;;  %v1286_v10 = vcombine.low %v231_v24, %v235_v25 }
  0xd3   :  { %76 = vadd.xlane.f32.xlu0 %v75_v20  ;;  %v1247_v20 = vcombine.high %v206_v15, %v210_v16  ;;  %v219_v15 = vld [vmem:[#allocation5 + $0xa8] sm:$0xff]  ;;  %v1280_v16 = vcombine.low %v207_v7, %v211_v8 }
  0xd4   :  { %v1281_v17 = vcombine.high %v215_v14, %v219_v15  ;;  %v315_v8 = vld [vmem:[#allocation5 + $0x3a8] sm:$0xff] }
  0xd5   :  { %994 = vmatprep.subr.bf16.mxu1 %v1247_v20  ;;  %v223_v20 = vld [vmem:[#allocation5 + $0xc8] sm:$0xff] }
  0xd6   :  { %996 = vmatpush1.bf16.msra.mxu1 %v1248_v22  ;;  %v1282_v22 = vcombine.low %v215_v14, %v219_v15  ;;  %v319_v15 = vld [vmem:[#allocation5 + $0x3c8] sm:$0xff] }
  0xd7   :  { %998 = vmatprep.subr.bf16.mxu1 %v1249_v26  ;;  %v1285_v26 = vcombine.high %v231_v24, %v235_v25  ;;  %v201_v24 = vld [vmem:[#allocation5 + $0x18] sm:$0xff] }
  0xda   :  { %1000 = vmatpush1.bf16.msra.mxu1 %v1250_v28  ;;  %v243_v28 = vld [vmem:[#allocation5 + $0x168] sm:$0xff] }
  0xdb   :  { %1002 = vmatprep.subr.bf16.mxu1 %v1251_v32  ;;  %v255_v32 = vld [vmem:[#allocation5 + $0x1c8] sm:$0xff] }
  0xde   :  { %1004 = vmatpush1.bf16.msra.mxu1 %v1252_v33  ;;  %v259_v33 = vld [vmem:[#allocation5 + $0x1e8] sm:$0xff] }
  0xdf   :  { %1006 = vmatprep.subr.bf16.mxu1 %v1253_v36  ;;  %v1291_v35 = vcombine.high %v255_v32, %v259_v33  ;;  %v263_v36 = vld [vmem:[#allocation5 + $0x208] sm:$0xff]  ;;  %v1292_v38 = vcombine.low %v255_v32, %v259_v33  ;;  %v209_v32 = vld [vmem:[#allocation5 + $0x58] sm:$0xff] }
  0xe0   :  { %v213_v33 = vld [vmem:[#allocation5 + $0x78] sm:$0xff] }
  0xe2   :  { %1008 = vmatpush1.bf16.msra.mxu1 %v1254_v37  ;;  %v267_v37 = vld [vmem:[#allocation5 + $0x228] sm:$0xff] }
  0xe3   :  { %1010 = vmatprep.subr.bf16.mxu1 %v1255_v40  ;;  %v1293_v39 = vcombine.high %v263_v36, %v267_v37  ;;  %v271_v40 = vld [vmem:[#allocation5 + $0x248] sm:$0xff]  ;;  %v1294_v42 = vcombine.low %v263_v36, %v267_v37 }
  0xe6   :  { %1012 = vmatpush1.bf16.msra.mxu1 %v1256_v41  ;;  %v275_v41 = vld [vmem:[#allocation5 + $0x268] sm:$0xff] }
  0xe7   :  { %1014 = vmatprep.subr.bf16.mxu1 %v1257_v44  ;;  %v1295_v43 = vcombine.high %v271_v40, %v275_v41  ;;  %v279_v44 = vld [vmem:[#allocation5 + $0x288] sm:$0xff]  ;;  %v1296_v46 = vcombine.low %v271_v40, %v275_v41  ;;  %v217_v40 = vld [vmem:[#allocation5 + $0x98] sm:$0xff] }
  0xe8   :  { %v221_v41 = vld [vmem:[#allocation5 + $0xb8] sm:$0xff] }
  0xea   :  { %1016 = vmatpush1.bf16.msra.mxu1 %v1258_v45  ;;  %v283_v45 = vld [vmem:[#allocation5 + $0x2a8] sm:$0xff] }
  0xeb   :  { %1018 = vmatprep.subr.bf16.mxu1 %v1259_v48  ;;  %v1297_v47 = vcombine.high %v279_v44, %v283_v45  ;;  %v287_v48 = vld [vmem:[#allocation5 + $0x2c8] sm:$0xff]  ;;  %v1298_v50 = vcombine.low %v279_v44, %v283_v45  ;;  %v1345_v45 = vcombine.high %v217_v40, %v221_v41 }
  0xee   :  { %1020 = vmatpush1.bf16.msra.mxu1 %v1260_v49  ;;  %v291_v49 = vld [vmem:[#allocation5 + $0x2e8] sm:$0xff] }
  0xef   :  { %1022 = vmatprep.subr.bf16.mxu1 %v1261_v52  ;;  %v1299_v51 = vcombine.high %v287_v48, %v291_v49  ;;  %v295_v52 = vld [vmem:[#allocation5 + $0x308] sm:$0xff]  ;;  %v1300_v54 = vcombine.low %v287_v48, %v291_v49  ;;  %v225_v48 = vld [vmem:[#allocation5 + $0xd8] sm:$0xff] }
  0xf0   :  { %v229_v49 = vld [vmem:[#allocation5 + $0xf8] sm:$0xff] }
  0xf2   :  { %1024 = vmatpush1.bf16.msra.mxu1 %v1262_v53  ;;  %v299_v53 = vld [vmem:[#allocation5 + $0x328] sm:$0xff] }
  0xf3   :  { %1026 = vmatprep.subr.bf16.mxu1 %v1263_v56  ;;  %v1301_v55 = vcombine.high %v295_v52, %v299_v53  ;;  %v1302_v56 = vcombine.low %v295_v52, %v299_v53  ;;  %v1347_v53 = vcombine.high %v225_v48, %v229_v49 }
  0xf6   :  { %1028 = vmatpush1.bf16.msra.mxu1 %v1264_v57  ;;  %v1270_v57 = vcombine.low %v1565_v2, %v1567_v3  ;;  %v318_v2 = vld [vmem:[#allocation5 + $0x3c0] sm:$0xff] }
  0xf7   :  { %1030 = vmatprep.subr.bf16.mxu1 %v1265_v60  ;;  %v303_v60 = vld [vmem:[#allocation5 + $0x348] sm:$0xff]  ;;  %v322_v3 = vld [vmem:[#allocation5 + $0x3e0] sm:$0xff] }
  0xf8   :  { %v1303_v63 = vcombine.high %v303_v60, %v307_v62  ;;  %v1275_v14 = vcombine.high %v318_v2, %v322_v3 }
  0xfa   :  { %1032 = vmatpush1.bf16.msra.mxu1 %v1266_v61  ;;  %v1271_v61 = vcombine.high %v302_v58, %v306_v59 }
  0xfb   :  { %1034 = vmatprep.subr.bf16.mxu1 %v1267_v0  ;;  %v1304_v0 = vcombine.low %v303_v60, %v307_v62  ;;  %v240_v62 = vld [vmem:[#allocation5 + $0x150] sm:$0xff] }
  0xfe   :  { %1036 = vmatpush1.bf16.msra.mxu1 %v1268_v1  ;;  %v1272_v1 = vcombine.low %v302_v58, %v306_v59  ;;  %v1348_v59 = vcombine.low %v225_v48, %v229_v49  ;;  %v292_v48 = vld [vmem:[#allocation5 + $0x2f0] sm:$0xff]  ;;  %v289_v49 = vld [vmem:[#allocation5 + $0x2d8] sm:$0xff] }
  0xff   :  { %1038 = vmatprep.subr.bf16.mxu1 %v1269_v4  ;;  %v310_v4 = vld [vmem:[#allocation5 + $0x380] sm:$0xff] }
 0x102   :  { %1040 = vmatpush1.bf16.msra.mxu1 %v1270_v57  ;;  %v237_v57 = vld [vmem:[#allocation5 + $0x138] sm:$0xff] }
 0x103   :  { %1042 = vmatprep.subr.bf16.mxu1 %v1271_v61 }
 0x106   :  { %1044 = vmatpush1.bf16.msra.mxu1 %v1272_v1  ;;  %v245_v1 = vld [vmem:[#allocation5 + $0x178] sm:$0xff] }
 0x160   :  { %v77_v5 = vpop.xlane.xlu0 %76 }
 0x161   :  { %v78_v6 = vrot.slane %v77_v5, 4 }
 0x163   :  { %v79_v11 = vadd.f32 %v78_v6, %v77_v5 }
 0x165   :  { %v80_v21 = vrot.slane %v79_v11, 2 }
 0x167   :  { %v81_v23 = vadd.f32 %v80_v21, %v79_v11  ;;  %v227_v21 = vld [vmem:[#allocation5 + $0xe8] sm:$0xff] }
 0x169   :  { %v82_v27 = vrot.slane %v81_v23, 1 }
 0x16b   :  { %v83_v29 = vadd.f32 %v82_v27, %v81_v23  ;;  %v1283_v23 = vcombine.high %v223_v20, %v227_v21  ;;  %v239_v27 = vld [vmem:[#allocation5 + $0x148] sm:$0xff] }
 0x16c   :  { %v1287_v13 = vcombine.high %v239_v27, %v243_v28  ;;  %v1288_v30 = vcombine.low %v239_v27, %v243_v28 }
 0x16d   :  { %1373 = vpush %v83_v29  ;;  %v251_v29 = vld [vmem:[#allocation5 + $0x1a8] sm:$0xff] }
 0x19e   :  { %s1374_s1 = spop %1373 }
 0x19f   :  { %v85_v5 = vstv %s1374_s1 }
 0x1a0   :  { %1387 = vrsqrt.f32 %v85_v5  ;;  %v314_v5 = vld [vmem:[#allocation5 + $0x3a0] sm:$0xff] }
 0x1a1   :  { %v1273_v7 = vcombine.high %v310_v4, %v314_v5 }
 0x1a3   :  { %1046 = vmatprep.subr.bf16.mxu1 %v1273_v7 }
 0x1aa   :  { %v1388_v6 = vpop.eup %1387 }
 0x1ab   :  { %1375 = vpush %v1388_v6  ;;  %v311_v6 = vld [vmem:[#allocation5 + $0x388] sm:$0xff] }
 0x1dc   :  { %s1376_s2 = spop %1375 }
 0x1dd   :  { %s88_s24 = smul.f32 10.0, %s1376_s2 }
 0x1df   :  { %v89_v9 = vstv %s88_s24 }
 0x1e0   :  { %v90_v11 = vmul.f32 %v89_v9, %v1553_v18  ;;  %v1284_v18 = vcombine.low %v223_v20, %v227_v21  ;;  %v1274_v9 = vcombine.low %v310_v4, %v314_v5  ;;  %v1276_v20 = vcombine.low %v318_v2, %v322_v3  ;;  %v249_v2 = vld [vmem:[#allocation5 + $0x198] sm:$0xff] }
 0x1e1   :  { %v253_v3 = vld [vmem:[#allocation5 + $0x1b8] sm:$0xff] }
 0x1e2   :  { %188 = vmatmul.mubr.f32.vlgmr.msra.gmra.mrb[0].mxu0 %v90_v11  ;;  %v1305_v11 = vcombine.high %v311_v6, %v315_v8  ;;  %1048 = vmatpush1.bf16.msra.mxu1 %v1274_v9  ;;  %v252_v9 = vld [vmem:[#allocation5 + $0x1b0] sm:$0xff] }
 0x1e3   :  { %1056 = vmatpush1.bf16.msra.mxu0 %v1278_v19  ;;  %v247_v19 = vld [vmem:[#allocation5 + $0x188] sm:$0xff]  ;;  %1050 = vmatprep.subr.bf16.mxu1 %v1275_v14 }
 0x1e4   :  { %1058 = vmatprep.subr.bf16.mxu0 %v1279_v12  ;;  %v1289_v31 = vcombine.high %v247_v19, %v251_v29  ;;  %v1290_v34 = vcombine.low %v247_v19, %v251_v29  ;;  %v1306_v12 = vcombine.low %v311_v6, %v315_v8  ;;  %v248_v8 = vld [vmem:[#allocation5 + $0x190] sm:$0xff] }
 0x1e5   :  { %v1321_v14 = vcombine.high %v248_v8, %v252_v9 }
 0x1e6   :  { %1052 = vmatpush1.bf16.msra.mxu1 %v1276_v20  ;;  %v257_v20 = vld [vmem:[#allocation5 + $0x1d8] sm:$0xff] }
 0x1e7   :  { %1060 = vmatpush1.bf16.msra.mxu0 %v1280_v16  ;;  %v323_v16 = vld [vmem:[#allocation5 + $0x3e8] sm:$0xff] }
 0x1e8   :  { %1062 = vmatprep.subr.bf16.mxu0 %v1281_v17  ;;  %v1307_v17 = vcombine.high %v319_v15, %v323_v16  ;;  %v1308_v21 = vcombine.low %v319_v15, %v323_v16  ;;  %v1353_v15 = vcombine.high %v249_v2, %v253_v3  ;;  %v256_v16 = vld [vmem:[#allocation5 + $0x1d0] sm:$0xff] }
 0x1eb   :  { %1064 = vmatpush1.bf16.msra.mxu0 %v1282_v22  ;;  %v200_v22 = vld [vmem:[#allocation5 + $0x10] sm:$0xff] }
 0x1ec   :  { %1066 = vmatprep.subr.bf16.mxu0 %v1283_v23  ;;  %v204_v23 = vld [vmem:[#allocation5 + $0x30] sm:$0xff] }
 0x1ed   :  { %v1309_v25 = vcombine.high %v200_v22, %v204_v23 }
 0x1ef   :  { %1068 = vmatpush1.bf16.msra.mxu0 %v1284_v18  ;;  %v205_v18 = vld [vmem:[#allocation5 + $0x38] sm:$0xff]  ;;  %1118 = vmatprep.subr.bf16.mxu1 %v1309_v25 }
 0x1f0   :  { %1070 = vmatprep.subr.bf16.mxu0 %v1285_v26  ;;  %v1310_v26 = vcombine.low %v200_v22, %v204_v23  ;;  %v1341_v27 = vcombine.high %v201_v24, %v205_v18  ;;  %v1342_v28 = vcombine.low %v201_v24, %v205_v18  ;;  %v1322_v22 = vcombine.low %v248_v8, %v252_v9  ;;  %v264_v18 = vld [vmem:[#allocation5 + $0x210] sm:$0xff] }
 0x1f1   :  { %v1354_v23 = vcombine.low %v249_v2, %v253_v3  ;;  %v312_v9 = vld [vmem:[#allocation5 + $0x390] sm:$0xff]  ;;  %v313_v3 = vld [vmem:[#allocation5 + $0x398] sm:$0xff] }
 0x1f2   :  { %v316_v2 = vld [vmem:[#allocation5 + $0x3b0] sm:$0xff] }
 0x1f3   :  { %1072 = vmatpush1.bf16.msra.mxu0 %v1286_v10 }
 0x1f4   :  { %1074 = vmatprep.subr.bf16.mxu0 %v1287_v13 }
 0x1f7   :  { %1076 = vmatpush1.bf16.msra.mxu0 %v1288_v30  ;;  %v208_v30 = vld [vmem:[#allocation5 + $0x50] sm:$0xff] }
 0x1f8   :  { %1078 = vmatprep.subr.bf16.mxu0 %v1289_v31  ;;  %v212_v31 = vld [vmem:[#allocation5 + $0x70] sm:$0xff] }
 0x1f9   :  { %v1311_v37 = vcombine.high %v208_v30, %v212_v31 }
 0x1fb   :  { %1080 = vmatpush1.bf16.msra.mxu0 %v1290_v34 }
 0x1fc   :  { %1082 = vmatprep.subr.bf16.mxu0 %v1291_v35  ;;  %v216_v35 = vld [vmem:[#allocation5 + $0x90] sm:$0xff] }
 0x1ff   :  { %1084 = vmatpush1.bf16.msra.mxu0 %v1292_v38  ;;  %v1343_v38 = vcombine.high %v209_v32, %v213_v33 }
 0x200   :  { %1086 = vmatprep.subr.bf16.mxu0 %v1293_v39  ;;  %v220_v39 = vld [vmem:[#allocation5 + $0xb0] sm:$0xff] }
 0x201   :  { %v1313_v44 = vcombine.high %v216_v35, %v220_v39 }
 0x203   :  { %1088 = vmatpush1.bf16.msra.mxu0 %v1294_v42  ;;  %v1312_v42 = vcombine.low %v208_v30, %v212_v31  ;;  %v272_v30 = vld [vmem:[#allocation5 + $0x250] sm:$0xff] }
 0x204   :  { %1090 = vmatprep.subr.bf16.mxu0 %v1295_v43  ;;  %v1344_v43 = vcombine.low %v209_v32, %v213_v33  ;;  %v276_v31 = vld [vmem:[#allocation5 + $0x270] sm:$0xff]  ;;  %v273_v32 = vld [vmem:[#allocation5 + $0x258] sm:$0xff] }
 0x205   :  { %v277_v33 = vld [vmem:[#allocation5 + $0x278] sm:$0xff] }
 0x207   :  { %1092 = vmatpush1.bf16.msra.mxu0 %v1296_v46  ;;  %v224_v46 = vld [vmem:[#allocation5 + $0xd0] sm:$0xff] }
 0x208   :  { %1094 = vmatprep.subr.bf16.mxu0 %v1297_v47  ;;  %v228_v47 = vld [vmem:[#allocation5 + $0xf0] sm:$0xff] }
 0x209   :  { %v1315_v52 = vcombine.high %v224_v46, %v228_v47  ;;  %v1316_v58 = vcombine.low %v224_v46, %v228_v47  ;;  %v288_v47 = vld [vmem:[#allocation5 + $0x2d0] sm:$0xff] }
 0x20b   :  { %1096 = vmatpush1.bf16.msra.mxu0 %v1298_v50  ;;  %v1314_v50 = vcombine.low %v216_v35, %v220_v39  ;;  %v280_v39 = vld [vmem:[#allocation5 + $0x290] sm:$0xff] }
 0x20c   :  { %1098 = vmatprep.subr.bf16.mxu0 %v1299_v51  ;;  %v1346_v51 = vcombine.low %v217_v40, %v221_v41  ;;  %v284_v40 = vld [vmem:[#allocation5 + $0x2b0] sm:$0xff]  ;;  %v281_v41 = vld [vmem:[#allocation5 + $0x298] sm:$0xff] }
 0x20f   :  { %1100 = vmatpush1.bf16.msra.mxu0 %v1300_v54  ;;  %v232_v54 = vld [vmem:[#allocation5 + $0x110] sm:$0xff] }
 0x210   :  { %1102 = vmatprep.subr.bf16.mxu0 %v1301_v55  ;;  %v236_v55 = vld [vmem:[#allocation5 + $0x130] sm:$0xff] }
 0x211   :  { %v1317_v60 = vcombine.high %v232_v54, %v236_v55  ;;  %v1318_v4 = vcombine.low %v232_v54, %v236_v55  ;;  %v296_v55 = vld [vmem:[#allocation5 + $0x310] sm:$0xff] }
 0x213   :  { %1104 = vmatpush1.bf16.msra.mxu0 %v1302_v56  ;;  %v233_v56 = vld [vmem:[#allocation5 + $0x118] sm:$0xff] }
 0x214   :  { %1106 = vmatprep.subr.bf16.mxu0 %v1303_v63  ;;  %v1349_v61 = vcombine.high %v233_v56, %v237_v57  ;;  %v244_v63 = vld [vmem:[#allocation5 + $0x170] sm:$0xff]  ;;  %v1350_v5 = vcombine.low %v233_v56, %v237_v57  ;;  %v297_v57 = vld [vmem:[#allocation5 + $0x318] sm:$0xff] }
 0x215   :  { %v1319_v6 = vcombine.high %v240_v62, %v244_v63  ;;  %v300_v56 = vld [vmem:[#allocation5 + $0x330] sm:$0xff] }
 0x217   :  { %1108 = vmatpush1.bf16.msra.mxu0 %v1304_v0  ;;  %v241_v0 = vld [vmem:[#allocation5 + $0x158] sm:$0xff] }
 0x218   :  { %1110 = vmatprep.subr.bf16.mxu0 %v1305_v11  ;;  %v1351_v7 = vcombine.high %v241_v0, %v245_v1  ;;  %v1320_v11 = vcombine.low %v240_v62, %v244_v63  ;;  %v304_v63 = vld [vmem:[#allocation5 + $0x350] sm:$0xff] }
 0x21b   :  { %1112 = vmatpush1.bf16.msra.mxu0 %v1306_v12  ;;  %v1352_v12 = vcombine.low %v241_v0, %v245_v1  ;;  %v308_v0 = vld [vmem:[#allocation5 + $0x370] sm:$0xff]  ;;  %v305_v1 = vld [vmem:[#allocation5 + $0x358] sm:$0xff] }
 0x21c   :  { %1114 = vmatprep.subr.bf16.mxu0 %v1307_v17  ;;  %v260_v17 = vld [vmem:[#allocation5 + $0x1f0] sm:$0xff] }
 0x21d   :  { %v1323_v24 = vcombine.high %v256_v16, %v260_v17 }
 0x21f   :  { %1116 = vmatpush1.bf16.msra.mxu0 %v1308_v21  ;;  %v261_v21 = vld [vmem:[#allocation5 + $0x1f8] sm:$0xff] }
 0x220   :  { %1182 = vmatprep.subr.bf16.mxu0 %v1341_v27  ;;  %v1355_v25 = vcombine.high %v257_v20, %v261_v21  ;;  %v265_v27 = vld [vmem:[#allocation5 + $0x218] sm:$0xff] }
 0x2b5   :  { %v189_v10 = vpop.f32.mrb[0].mxu0 }
 0x2b6   :  { %v194_v13 = vmul.f32 1.442695, %v189_v10  ;;  %v191_v19 = vpop.f32.mrb[1].mxu0  ;;  %v1324_v10 = vcombine.low %v256_v16, %v260_v17  ;;  %v320_v17 = vld [vmem:[#allocation5 + $0x3d0] sm:$0xff] }
 0x2b7   :  { %v196_v29 = vmul.f32 1.442695, %v191_v19 }
 0x2b9   :  { %1389 = vpow2.f32 %v196_v29 }
 0x2ba   :  { %1391 = vpow2.f32 %v194_v13  ;;  %v1356_v13 = vcombine.low %v257_v20, %v261_v21  ;;  %v324_v20 = vld [vmem:[#allocation5 + $0x3f0] sm:$0xff]  ;;  %v321_v21 = vld [vmem:[#allocation5 + $0x3d8] sm:$0xff] }
 0x2c3   :  { %v1390_v34 = vpop.eup %1389 }
 0x2c4   :  { %v1577_v36 = vpop.eup %1391  ;;  %646 = vmatprep.mubr.f32.mxu1 %v1390_v34  ;;  %717 = vmatprep.mubr.f32.mxu0 %v1390_v34 }
 0x2c5   :  { %647 = vmatmul.mubr.f32.vlgmr.msra.gmra.mrb[0].mxu1 %v1577_v36  ;;  %718 = vmatmul.mubr.f32.vlgmr.msra.gmra.mrb[2].mxu0 %v1577_v36 }
 0x2c6   :  { %1120 = vmatpush1.bf16.msra.mxu1 %v1310_v26  ;;  %1184 = vmatpush1.bf16.msra.mxu0 %v1342_v28  ;;  %v268_v26 = vld [vmem:[#allocation5 + $0x230] sm:$0xff]  ;;  %v269_v28 = vld [vmem:[#allocation5 + $0x238] sm:$0xff] }
 0x2c7   :  { %788 = vmatprep.mubr.f32.mxu1 %v1390_v34  ;;  %859 = vmatprep.mubr.f32.mxu0 %v1390_v34  ;;  %v1325_v19 = vcombine.high %v264_v18, %v268_v26  ;;  %v1357_v29 = vcombine.high %v265_v27, %v269_v28  ;;  %v1326_v34 = vcombine.low %v264_v18, %v268_v26 }
 0x2c8   :  { %1122 = vmatprep.subr.bf16.mxu1 %v1311_v37  ;;  %1186 = vmatprep.subr.bf16.mxu0 %v1343_v38  ;;  %v1358_v35 = vcombine.low %v265_v27, %v269_v28  ;;  %v1327_v37 = vcombine.high %v272_v30, %v276_v31  ;;  %v1359_v38 = vcombine.high %v273_v32, %v277_v33 }
 0x2c9   :  { %v1340_v26 = vcombine.low %v320_v17, %v324_v20 }
 0x2ca   :  { %1124 = vmatpush1.bf16.msra.mxu1 %v1312_v42  ;;  %1188 = vmatpush1.bf16.msra.mxu0 %v1344_v43  ;;  %v285_v42 = vld [vmem:[#allocation5 + $0x2b8] sm:$0xff]  ;;  %v1328_v43 = vcombine.low %v272_v30, %v276_v31  ;;  %v897_v31 = vlaneseq }
 0x2cb   :  { %1126 = vmatprep.subr.bf16.mxu1 %v1313_v44  ;;  %1190 = vmatprep.subr.bf16.mxu0 %v1345_v45  ;;  %v1360_v44 = vcombine.low %v273_v32, %v277_v33  ;;  %v1329_v45 = vcombine.high %v280_v39, %v284_v40  ;;  %v1361_v46 = vcombine.high %v281_v41, %v285_v42 }
 0x2cc   :  { %v898_v33 = vshrl.u32 %v897_v31, 7 }
 0x2ce   :  { %1128 = vmatpush1.bf16.msra.mxu1 %v1314_v50  ;;  %1192 = vmatpush1.bf16.msra.mxu0 %v1346_v51  ;;  %v293_v50 = vld [vmem:[#allocation5 + $0x2f8] sm:$0xff]  ;;  %v1330_v51 = vcombine.low %v280_v39, %v284_v40 }
 0x2cf   :  { %1130 = vmatprep.subr.bf16.mxu1 %v1315_v52  ;;  %1194 = vmatprep.subr.bf16.mxu0 %v1347_v53  ;;  %v1362_v52 = vcombine.low %v281_v41, %v285_v42  ;;  %v1331_v53 = vcombine.high %v288_v47, %v292_v48  ;;  %v1363_v54 = vcombine.high %v289_v49, %v293_v50 }
 0x2d2   :  { %1132 = vmatpush1.bf16.msra.mxu1 %v1316_v58  ;;  %1196 = vmatpush1.bf16.msra.mxu0 %v1348_v59  ;;  %v301_v58 = vld [vmem:[#allocation5 + $0x338] sm:$0xff]  ;;  %v1332_v59 = vcombine.low %v288_v47, %v292_v48 }
 0x2d3   :  { %1134 = vmatprep.subr.bf16.mxu1 %v1317_v60  ;;  %1198 = vmatprep.subr.bf16.mxu0 %v1349_v61  ;;  %v1364_v60 = vcombine.low %v289_v49, %v293_v50  ;;  %v1333_v61 = vcombine.high %v296_v55, %v300_v56  ;;  %v1365_v62 = vcombine.high %v297_v57, %v301_v58 }
 0x2d6   :  { %1136 = vmatpush1.bf16.msra.mxu1 %v1318_v4  ;;  %1200 = vmatpush1.bf16.msra.mxu0 %v1350_v5  ;;  %v309_v4 = vld [vmem:[#allocation5 + $0x378] sm:$0xff]  ;;  %v1334_v5 = vcombine.low %v296_v55, %v300_v56 }
 0x2d7   :  { %1138 = vmatprep.subr.bf16.mxu1 %v1319_v6  ;;  %1202 = vmatprep.subr.bf16.mxu0 %v1351_v7  ;;  %v1366_v6 = vcombine.low %v297_v57, %v301_v58  ;;  %v1335_v7 = vcombine.high %v304_v63, %v308_v0  ;;  %v1367_v8 = vcombine.high %v305_v1, %v309_v4 }
 0x2da   :  { %1140 = vmatpush1.bf16.msra.mxu1 %v1320_v11  ;;  %1204 = vmatpush1.bf16.msra.mxu0 %v1352_v12  ;;  %v317_v11 = vld [vmem:[#allocation5 + $0x3b8] sm:$0xff]  ;;  %v1336_v12 = vcombine.low %v304_v63, %v308_v0 }
 0x2db   :  { %1142 = vmatprep.subr.bf16.mxu1 %v1321_v14  ;;  %1206 = vmatprep.subr.bf16.mxu0 %v1353_v15  ;;  %v1368_v14 = vcombine.low %v305_v1, %v309_v4  ;;  %v1337_v15 = vcombine.high %v312_v9, %v316_v2  ;;  %v1369_v16 = vcombine.high %v313_v3, %v317_v11 }
 0x2de   :  { %1144 = vmatpush1.bf16.msra.mxu1 %v1322_v22  ;;  %1208 = vmatpush1.bf16.msra.mxu0 %v1354_v23  ;;  %v325_v22 = vld [vmem:[#allocation5 + $0x3f8] sm:$0xff]  ;;  %v1338_v23 = vcombine.low %v312_v9, %v316_v2 }
 0x2df   :  { %1146 = vmatprep.subr.bf16.mxu1 %v1323_v24  ;;  %1210 = vmatprep.subr.bf16.mxu0 %v1355_v25  ;;  %v1370_v24 = vcombine.low %v313_v3, %v317_v11  ;;  %v1339_v25 = vcombine.high %v320_v17, %v324_v20  ;;  %v1371_v18 = vcombine.high %v321_v21, %v325_v22 }
 0x2e0   :  { %v1372_v27 = vcombine.low %v321_v21, %v325_v22 }
 0x2e2   :  { %1148 = vmatpush1.bf16.msra.mxu1 %v1324_v10  ;;  %1212 = vmatpush1.bf16.msra.mxu0 %v1356_v13 }
 0x2e3   :  { %1150 = vmatprep.subr.bf16.mxu1 %v1325_v19  ;;  %1214 = vmatprep.subr.bf16.mxu0 %v1357_v29  ;;  %v1488_v29 = vmov 1966171168  }
 0x2e4   :  { %v895_v30 = vunpack.c.l.s4 %v1488_v29 }
 0x2e6   :  { %1152 = vmatpush1.bf16.msra.mxu1 %v1326_v34  ;;  %1216 = vmatpush1.bf16.msra.mxu0 %v1358_v35  ;;  %v896_v32 = vunpack.c.0.s8 %v895_v30 }
 0x2e7   :  { %1154 = vmatprep.subr.bf16.mxu1 %v1327_v37  ;;  %1218 = vmatprep.subr.bf16.mxu0 %v1359_v38 }
 0x2e8   :  { %v899_v41 = vsub.s32 %v896_v32, %v898_v33 }
 0x2ea   :  { %1156 = vmatpush1.bf16.msra.mxu1 %v1328_v43  ;;  %1220 = vmatpush1.bf16.msra.mxu0 %v1360_v44 }
 0x2eb   :  { %1158 = vmatprep.subr.bf16.mxu1 %v1329_v45  ;;  %1222 = vmatprep.subr.bf16.mxu0 %v1361_v46 }
 0x2ee   :  { %1160 = vmatpush1.bf16.msra.mxu1 %v1330_v51  ;;  %1224 = vmatpush1.bf16.msra.mxu0 %v1362_v52 }
 0x2ef   :  { %1162 = vmatprep.subr.bf16.mxu1 %v1331_v53  ;;  %1226 = vmatprep.subr.bf16.mxu0 %v1363_v54 }
 0x2f2   :  { %1164 = vmatpush1.bf16.msra.mxu1 %v1332_v59  ;;  %1228 = vmatpush1.bf16.msra.mxu0 %v1364_v60 }
 0x2f3   :  { %1166 = vmatprep.subr.bf16.mxu1 %v1333_v61  ;;  %1230 = vmatprep.subr.bf16.mxu0 %v1365_v62 }
 0x2f6   :  { %1168 = vmatpush1.bf16.msra.mxu1 %v1334_v5  ;;  %1232 = vmatpush1.bf16.msra.mxu0 %v1366_v6 }
 0x2f7   :  { %1170 = vmatprep.subr.bf16.mxu1 %v1335_v7  ;;  %1234 = vmatprep.subr.bf16.mxu0 %v1367_v8 }
 0x2fa   :  { %1172 = vmatpush1.bf16.msra.mxu1 %v1336_v12  ;;  %1236 = vmatpush1.bf16.msra.mxu0 %v1368_v14 }
 0x2fb   :  { %1174 = vmatprep.subr.bf16.mxu1 %v1337_v15  ;;  %1238 = vmatprep.subr.bf16.mxu0 %v1369_v16 }
 0x2fe   :  { %1176 = vmatpush1.bf16.msra.mxu1 %v1338_v23  ;;  %1240 = vmatpush1.bf16.msra.mxu0 %v1370_v24 }
 0x2ff   :  { %1178 = vmatprep.subr.bf16.mxu1 %v1339_v25  ;;  %1242 = vmatprep.subr.bf16.mxu0 %v1371_v18 }
 0x302   :  { %1180 = vmatpush1.bf16.msra.mxu1 %v1340_v26  ;;  %1244 = vmatpush1.bf16.msra.mxu0 %v1372_v27 }
 0x305   :  { %789 = vmatmul.mubr.f32.vlgmr.msra.gmra.mrb[2].mxu1 %v1577_v36  ;;  %860 = vmatmul.mubr.f32.vlgmr.msra.gmra.mrb[4].mxu0 %v1577_v36 }
 0x398   :  { %v648_v28 = vpop.f32.mrb[0].mxu1  ;;  %v719_v10 = vpop.f32.mrb[2].mxu0 }
 0x399   :  { %1393 = vlog2.f32 %v648_v28  ;;  %v650_v13 = vpop.f32.mrb[1].mxu1  ;;  %v721_v19 = vpop.f32.mrb[3].mxu0 }
 0x39a   :  { %1395 = vlog2.f32 %v719_v10 }
 0x39b   :  { %1397 = vlog2.f32 %v650_v13 }
 0x39c   :  { %1399 = vlog2.f32 %v721_v19 }
 0x3a3   :  { %v1394_v34 = vpop.eup %1393 }
 0x3a4   :  { %v1396_v35 = vpop.eup %1395  ;;  %v867_v37 = vmul.f32 0.6931472, %v1394_v34 }
 0x3a5   :  { %v1398_v38 = vpop.eup %1397  ;;  %v871_v39 = vmul.f32 0.6931472, %v1396_v35 }
 0x3a6   :  { %v1400_v40 = vpop.eup %1399  ;;  %v869_v36 = vmul.f32 0.6931472, %v1398_v38 }
 0x3a7   :  { %v873_v42 = vmul.f32 0.6931472, %v1400_v40 }
 0x3a8   :  { %v890_v43 = vcombine.low %v867_v37, %v869_v36 }
 0x3a9   :  { %v891_v44 = vcombine.low %v871_v39, %v873_v42 }
 0x3aa   :  { %v900_v45 = vrot.slane %v890_v43, %v899_v41 }
 0x3ab   :  { %v907_v46 = vrot.slane %v891_v44, %v899_v41 }
 0x3ad   :  { %v922_v47 = vcombine.low %v900_v45, %v907_v46 }
 0x3af   :  { %v930_v1 = vrot.slane %v922_v47, %v899_v41 }
 0x3d8   :  { %v790_v48 = vpop.f32.mrb[2].mxu1  ;;  %v861_v49 = vpop.f32.mrb[4].mxu0 }
 0x3d9   :  { %1401 = vlog2.f32 %v790_v48  ;;  %v792_v50 = vpop.f32.mrb[3].mxu1  ;;  %v863_v51 = vpop.f32.mrb[5].mxu0 }
 0x3da   :  { %1403 = vlog2.f32 %v861_v49 }
 0x3db   :  { %1405 = vlog2.f32 %v792_v50 }
 0x3dc   :  { %1407 = vlog2.f32 %v863_v51 }
 0x3e3   :  { %v1402_v52 = vpop.eup %1401 }
 0x3e4   :  { %v1404_v53 = vpop.eup %1403  ;;  %v875_v54 = vmul.f32 0.6931472, %v1402_v52 }
 0x3e5   :  { %v1406_v55 = vpop.eup %1405  ;;  %v879_v56 = vmul.f32 0.6931472, %v1404_v53 }
 0x3e6   :  { %v1408_v57 = vpop.eup %1407  ;;  %v877_v58 = vmul.f32 0.6931472, %v1406_v55 }
 0x3e7   :  { %v881_v59 = vmul.f32 0.6931472, %v1408_v57 }
 0x3e8   :  { %v892_v60 = vcombine.low %v875_v54, %v877_v58 }
 0x3e9   :  { %v893_v61 = vcombine.low %v879_v56, %v881_v59 }
 0x3ea   :  { %v914_v62 = vrot.slane %v892_v60, %v899_v41 }
 0x3eb   :  { %v921_v63 = vrot.slane %v893_v61, %v899_v41 }
 0x3ed   :  { %v923_v0 = vcombine.low %v914_v62, %v921_v63 }
 0x3ef   :  { %v937_v4 = vrot.slane %v923_v0, %v899_v41 }
 0x3f1   :  { %v938_v5 = vcombine.low %v930_v1, %v937_v4 }
 0x3f3   :  { %940 = vst [vmem:[#allocation7] sm:$0xff] %v938_v5 }
 0x3f4   :  { %1464 = shalt.err (!%p1461_p6)
}
 0x3f5   :  { %s1465_s30 = scalar_lea.hbm %s1600_s5, 128 }
 0x3f6   :  { %p1466_p7 = scmp.ne.s32.totalorder %s1600_s5, %s1465_s30  ;;  %p1469_p8 = scmp.lt.u32.totalorder %s1465_s30, %s1600_s5 }
 0x3f8   :  { %p1471_p9 = pnand %p1469_p8, %p1466_p7 }
 0x3fa   :  { %1474 = shalt.err (!%p1471_p9)
}
 0x3fb   :  { %950 = dma.vmem_to_hbm [thread:$0]  %s948_s26, 128, %s1600_s5, [#allocation4]  }
 0x3fc   :  { %1479 = dma.done.wait [#allocation4], 128  }
 0x3fd   :  { %1480 = vsyncadd [#allocation4], 4294967168 }
 0x3fe   :  { %954 = vsyncpa [#allocation3], 1 }
 0x3ff   :  { %955 = vsyncpa [#allocation6], 1 }
 0x400   :  { %956 = vsyncpa [#allocation4], 1 }

</bundles_post_ra>
